<compile_context>
chip_gen: v7x
topology: tpu7x:2x2x1
jax: 0.10.0
libtpu: 0.0.40
codegen_flags: <defaults>
</compile_context>

<pallas_src>
import functools

import jax
import jax.numpy as jnp
from jax.experimental import pallas as pl
from jax.experimental.pallas import tpu as pltpu

LANE = 128
SUBLANE = 8
_VMEM_LIMIT = 32 * 1024 * 1024          # safe on v5e / v6e / v7x
_TARGET_BLOCK_BYTES = 2 * 1024 * 1024   # ~2 MiB blocks -> ~8 MiB resident (2 in + 2 out)


def _choose_tiles(n_rows, n_cols, itemsize, target_block_bytes=_TARGET_BLOCK_BYTES):
    """Pick (tr, tc) tile sizes satisfying the (8,128) rule, ~target bytes/block."""
    # Lane tile: multiple of 128 (or the full width when the array is narrower).
    if n_cols < LANE:
        tc = n_cols
    else:
        tc = min((n_cols // LANE) * LANE, 2048)
    # Sublane tile: multiple of 8 (or full height), sized to hit the byte target.
    if n_rows < SUBLANE:
        tr = n_rows
    else:
        tr = max(SUBLANE, (target_block_bytes // (tc * itemsize)) // SUBLANE * SUBLANE)
        tr = min(tr, (n_rows // SUBLANE) * SUBLANE)
    return tr, tc


# ---------------------------------------------------------------------------
# Kernel 1: global average pool  (B*C, H*W) -> (B*C, 1)
# ---------------------------------------------------------------------------
def _pool_sum_kernel(x_ref, o_ref, *, n_valid, tc):
    j = pl.program_id(1)

    @pl.when(j == 0)
    def _():
        o_ref[...] = jnp.zeros_like(o_ref)

    x = x_ref[...].astype(jnp.float32)
    if n_valid % tc != 0:
        # Mask out-of-bounds lanes of the trailing partial block.
        col = j * tc + jax.lax.broadcasted_iota(jnp.int32, x.shape, 1)
        x = jnp.where(col < n_valid, x, 0.0)
    o_ref[...] += jnp.sum(x, axis=1, keepdims=True)


def _spatial_mean(x2d):
    n_rows, n_cols = x2d.shape
    tr, tc = _choose_tiles(n_rows, n_cols, x2d.dtype.itemsize)
    grid = (pl.cdiv(n_rows, tr), pl.cdiv(n_cols, tc))

    sums = pl.pallas_call(
        functools.partial(_pool_sum_kernel, n_valid=n_cols, tc=tc),
        out_shape=jax.ShapeDtypeStruct((n_rows, 1), jnp.float32),
        grid_spec=pltpu.PrefetchScalarGridSpec(
            num_scalar_prefetch=0,
            grid=grid,
            in_specs=[pl.BlockSpec((tr, tc), lambda i, j: (i, j))],
            out_specs=pl.BlockSpec((tr, 1), lambda i, j: (i, 0)),
        ),
        compiler_params=pltpu.CompilerParams(
            dimension_semantics=("parallel", "arbitrary"),
            vmem_limit_bytes=_VMEM_LIMIT,
        ),
    )(x2d)
    return sums * (1.0 / n_cols)


# ---------------------------------------------------------------------------
# Kernel 2: elementwise dynamic ReLU  out = max(x*a1 + b1, x*a2 + b2)
# coefficients are per-row (per (b, c)) scalars broadcast over the lane dim.
# ---------------------------------------------------------------------------
def _dyrelu_apply_kernel(x_ref, a1_ref, b1_ref, a2_ref, b2_ref, o_ref):
    x = x_ref[...].astype(jnp.float32)
    a1 = a1_ref[...]      # (tr, 1) f32, broadcasts over lanes
    b1 = b1_ref[...]
    a2 = a2_ref[...]
    b2 = b2_ref[...]
    o_ref[...] = jnp.maximum(x * a1 + b1, x * a2 + b2).astype(o_ref.dtype)


def _dyrelu_apply(x2d, a1, b1, a2, b2):
    n_rows, n_cols = x2d.shape
    tr, tc = _choose_tiles(n_rows, n_cols, x2d.dtype.itemsize)
    grid = (pl.cdiv(n_rows, tr), pl.cdiv(n_cols, tc))

    coef_spec = pl.BlockSpec((tr, 1), lambda i, j: (i, 0))
    return pl.pallas_call(
        _dyrelu_apply_kernel,
        out_shape=jax.ShapeDtypeStruct((n_rows, n_cols), x2d.dtype),
        grid_spec=pltpu.PrefetchScalarGridSpec(
            num_scalar_prefetch=0,
            grid=grid,
            in_specs=[
                pl.BlockSpec((tr, tc), lambda i, j: (i, j)),
                coef_spec, coef_spec, coef_spec, coef_spec,
            ],
            out_specs=pl.BlockSpec((tr, tc), lambda i, j: (i, j)),
        ),
        compiler_params=pltpu.CompilerParams(
            dimension_semantics=("parallel", "parallel"),
            vmem_limit_bytes=_VMEM_LIMIT,
        ),
    )(x2d, a1, b1, a2, b2)


# ---------------------------------------------------------------------------
# Full DYReLU forward (default config: exp=4, use_spatial=False)
# ---------------------------------------------------------------------------
def dyrelu_forward(x, w1, c1, w2, c2, *,
                   lambda_a=1.0, init_a=(1.0, 0.0), init_b=(0.0, 0.0), h_max=1.0):
    """x: (B, C, H, W); w1: (squeeze, C); c1: (squeeze,); w2: (4*C, squeeze); c2: (4*C,)."""
    B, C, H, W = x.shape
    oup = w2.shape[0] // 4
    assert oup == C, "elementwise DyReLU path assumes oup == inp"

    x2d = x.reshape(B * C, H * W)

    # (1) global average pool over H*W  -- Pallas reduction kernel.
    pooled = _spatial_mean(x2d).reshape(B, C)

    # (2) tiny FC:  Linear -> ReLU -> Linear -> h_sigmoid  (plain JAX, microscopic).
    h = jnp.maximum(pooled @ w1.T + c1, 0.0)
    y = h @ w2.T + c2
    y = jnp.clip(y + 3.0, 0.0, 6.0) * (h_max / 6.0)       # h_sigmoid

    # (3) coefficient transform (exp == 4 path: a1, b1, a2, b2).
    # TODO(synk): exp==2 / exp==1 modes and the optional use_spatial conv+BN+softmax
    # branch are not implemented (module defaults do not use them).
    a1, b1, a2, b2 = jnp.split(y, 4, axis=-1)              # each (B, C)
    lam = lambda_a * 2.0
    a1 = (a1 - 0.5) * lam + init_a[0]
    a2 = (a2 - 0.5) * lam + init_a[1]
    b1 = b1 - 0.5 + init_b[0]
    b2 = b2 - 0.5 + init_b[1]

    def _col(v):
        return v.reshape(B * C, 1).astype(jnp.float32)

    # (4) elementwise max of the two affine maps -- main Pallas kernel.
    out2d = _dyrelu_apply(x2d, _col(a1), _col(b1), _col(a2), _col(b2))
    return out2d.reshape(B, C, H, W)


# ---------------------------------------------------------------------------
# Pure-JAX reference (same math as the PyTorch module) + self-test
# ---------------------------------------------------------------------------
def _dyrelu_ref(x, w1, c1, w2, c2, *,
                lambda_a=1.0, init_a=(1.0, 0.0), init_b=(0.0, 0.0), h_max=1.0):
    y = jnp.mean(x, axis=(2, 3))
    h = jnp.maximum(y @ w1.T + c1, 0.0)
    z = h @ w2.T + c2
    z = jnp.clip(z + 3.0, 0.0, 6.0) * (h_max / 6.0)
    a1, b1, a2, b2 = jnp.split(z, 4, axis=-1)
    lam = lambda_a * 2.0
    a1 = ((a1 - 0.5) * lam + init_a[0])[:, :, None, None]
    a2 = ((a2 - 0.5) * lam + init_a[1])[:, :, None, None]
    b1 = (b1 - 0.5 + init_b[0])[:, :, None, None]
    b2 = (b2 - 0.5 + init_b[1])[:, :, None, None]
    return jnp.maximum(x * a1 + b1, x * a2 + b2)


if __name__ == "__main__":
    key = jax.random.PRNGKey(0)
    kx, k1, k2, k3, k4 = jax.random.split(key, 5)

    B, C, H, W = 2, 4, 16, 16
    reduction = 4
    squeeze = C // reduction       # 1
    exp = 4                        # K2=True, use_bias=True (module defaults)

    x = jax.random.normal(kx, (B, C, H, W), dtype=jnp.float32) * 2.0
    w1 = jax.random.normal(k1, (squeeze, C), dtype=jnp.float32) * 0.5
    c1 = jax.random.normal(k2, (squeeze,), dtype=jnp.float32) * 0.1
    w2 = jax.random.normal(k3, (C * exp, squeeze), dtype=jnp.float32) * 0.5
    c2 = jax.random.normal(k4, (C * exp,), dtype=jnp.float32) * 0.1

    out = dyrelu_forward(x, w1, c1, w2, c2)
    out = jax.block_until_ready(out)

    ref = _dyrelu_ref(x, w1, c1, w2, c2)
    assert out.shape == x.shape and out.dtype == x.dtype
    err = float(jnp.max(jnp.abs(out - ref)))
    assert jnp.allclose(out, ref, atol=1e-5, rtol=1e-5), err

    print("KERNEL_OK")
</pallas_src>

<mosaic_0001>
module attributes {stable_mosaic.version = 11 : i64} {
  func.func @_pool_sum_kernel(%arg0: i32, %arg1: i32, %arg2: memref<8x256xf32, #tpu.memory_space<vmem>>, %arg3: memref<8x1xf32, #tpu.memory_space<vmem>>) attributes {dimension_semantics = [#tpu.dimension_semantics<parallel>, #tpu.dimension_semantics<arbitrary>], iteration_bounds = array<i64: 1, 1>, scalar_prefetch = 0 : i64, scratch_operands = 0 : i64, tpu.core_type = #tpu.core_type<tc>, window_params = [{transform_indices = @transform_0, window_bounds = array<i64: 8, 256>}, {transform_indices = @transform_1, window_bounds = array<i64: 8, 1>}]} {
    %c0_i32 = arith.constant 0 : i32
    %0 = arith.cmpi eq, %arg1, %c0_i32 : i32
    %1 = arith.extui %0 : i1 to i32
    %c0_i32_0 = arith.constant 0 : i32
    %2 = arith.cmpi ne, %1, %c0_i32_0 : i32
    scf.if %2 {
      %cst_6 = arith.constant 0.000000e+00 : f32
      %9 = vector.broadcast %cst_6 : f32 to vector<8x1xf32>
      %c0_7 = arith.constant 0 : index
      %c0_8 = arith.constant 0 : index
      %10 = vector.load %arg3[%c0_7, %c0_8] : memref<8x1xf32, #tpu.memory_space<vmem>>, vector<8x1xf32>
      tpu.vector_store %arg3[%c0_7, %c0_8], %9 {strides = array<i32>} : memref<8x1xf32, #tpu.memory_space<vmem>>, vector<8x1xf32>,
    } else {
    }
    %c0 = arith.constant 0 : index
    %c0_1 = arith.constant 0 : index
    %3 = vector.load %arg2[%c0, %c0_1] : memref<8x256xf32, #tpu.memory_space<vmem>>, vector<8x256xf32>
    %c0_2 = arith.constant 0 : index
    %c0_3 = arith.constant 0 : index
    %4 = vector.load %arg3[%c0_2, %c0_3] : memref<8x1xf32, #tpu.memory_space<vmem>>, vector<8x1xf32>
    %cst = arith.constant dense<0.000000e+00> : vector<8xf32>
    %5 = vector.multi_reduction <add>, %3, %cst [1] : vector<8x256xf32> to vector<8xf32>
    %6 = vector.shape_cast %5 : vector<8xf32> to vector<8x1xf32>
    %7 = arith.addf %4, %6 : vector<8x1xf32>
    %c0_4 = arith.constant 0 : index
    %c0_5 = arith.constant 0 : index
    %8 = vector.load %arg3[%c0_4, %c0_5] : memref<8x1xf32, #tpu.memory_space<vmem>>, vector<8x1xf32>
    tpu.vector_store %arg3[%c0_4, %c0_5], %7 {strides = array<i32>} : memref<8x1xf32, #tpu.memory_space<vmem>>, vector<8x1xf32>,
    return
  }
  func.func @transform_0(%arg0: i32, %arg1: i32) -> (i32, i32) {
    %c0_i32 = arith.constant 0 : i32
    return %arg0, %arg1 : i32, i32
  }
  func.func @transform_1(%arg0: i32, %arg1: i32) -> (i32, i32) {
    %c0_i32 = arith.constant 0 : i32
    %c0_i32_0 = arith.constant 0 : i32
    return %arg0, %c0_i32 : i32, i32
  }
}

</mosaic_0001>

<bundles_post_ra>
// kernel: tpu_custom_call.1
= control target key start
LH: loop header
LB: loop body
LE: loop exit
PB: predicated region body
PF: predicated region fallthrough
CT: control target
= control target key end

     0   :  { %6 = vsyncpa [#allocation3], 0  ;;  %s66_s6 = smov [#allocation2]   ;;  %s99_s0 = inlined_call_operand.hbm [shape: f32[8,256], index: 0, kind: input, shape index: {}]   ;;  %s100_s1 = inlined_call_operand.vmem [shape: f32[8,1], index: 1, kind: output, shape index: {}]  }
   0x1   :  { %s13_s7 = sshll.u32 %s66_s6, 4  ;;  %s42_s10 = scalar_lea.hbm %s99_s0, 256  ;;  %s14_s7 = int_to_ptr.vmem [resolvable:$true] %s13_s7 }
   0x2   :  { %p43_p0 = scmp.ne.s32.totalorder %s99_s0, %s42_s10  ;;  %p46_p1 = scmp.lt.u32.totalorder %s42_s10, %s99_s0 }
   0x4   :  { %p48_p2 = pnand %p46_p1, %p43_p0 }
   0x6   :  { %51 = shalt.err (!%p48_p2)
}
   0x7   :  { %s52_s15 = scalar_lea.vmem %s14_s7, 256  ;;  %p57_p4 = scmp.lt.s32.totalorder %s14_s7, %s14_s7 }
   0x8   :  { %p53_p3 = scmp.ne.s32.totalorder %s14_s7, %s52_s15  ;;  %p58_p5 = scmp.lt.s32.totalorder %s52_s15, %s52_s15 }
   0xa   :  { %p59_p6 = por %p58_p5, %p57_p4 }
   0xc   :  { %p60_p7 = pnand %p59_p6, %p53_p3 }
   0xe   :  { %63 = shalt.err (!%p60_p7)
}
   0xf   :  { %16 = dma.hbm_to_vmem [thread:$0]  %s99_s0, 256, %s14_s7, [#allocation3]  }
  0x10   :  { %64 = dma.done.wait [#allocation3], 256  }
  0x11   :  { %65 = vsyncadd [#allocation3], 4294967040  ;;  %vm24_vm0 = vcmask 7168   ;;  %v67_v0 = vmov 0.0   ;;  %v26_v1 = vld [vmem:[#allocation2] sm:$0xff]  ;;  %v27_v2 = vld [vmem:[#allocation2 + $0x8] sm:$0xff] }
  0x12   :  { %25 = vst.msk [vmem:[%s100_s1] sm:$0xff] %vm24_vm0, %v67_v0  ;;  %v29_v3 = vadd.f32 %v27_v2, %v26_v1 }
  0x14   :  { %30 = vadd.xlane.f32.xlu0 %v29_v3 }
  0x19   :  { %v28_v4 = vld [vmem:[%s100_s1] sm:$0xff] }
  0xa1   :  { %v31_v5 = vpop.xlane.xlu0 %30 }
  0xa2   :  { %v32_v6 = vadd.f32 %v31_v5, %v28_v4 }
  0xa4   :  { %34 = vst.msk [vmem:[%s100_s1] sm:$0xff] %vm24_vm0, %v32_v6 }
  0xa5   :  { %39 = vsyncpa [#allocation3], 1 }

</bundles_post_ra>
